<compile_context>
chip_gen: v7x
topology: tpu7x:2x2x1
jax: 0.10.0
libtpu: 0.0.40
codegen_flags: <defaults>
</compile_context>

<pallas_src>
import functools

import jax
import jax.numpy as jnp
from jax.experimental import pallas as pl
from jax.experimental.pallas import tpu as pltpu


def psa_p_kernel(x_ref, wcat_ref, wupT_ref, o_ref, *, seg):
    # x_ref block : (bt, C, HW)        -- C on sublanes, HW on lanes
    # wcat_ref    : (3*seg + 8, C)     -- rows: [v_right|q_left|v_left|q_right], each 8-aligned
    # wupT_ref    : (planes, seg)      -- conv_up weight transposed, zero-padded cols (f32)
    wcat = wcat_ref[...]                          # compute dtype (f32 or bf16)
    wup_t = wupT_ref[...].astype(jnp.float32)
    cdt = wcat.dtype
    bt = x_ref.shape[0]

    def body(bi, carry):
        x = x_ref[bi]                                                    # (C, HW) storage dtype

        # One fused pass of x through the MXU, f32 accumulation.
        proj = jnp.dot(wcat, x.astype(cdt),
                       preferred_element_type=jnp.float32)               # (3*seg+8, HW) f32

        # Segments are 8-aligned; padded rows are exactly zero (zero weight rows),
        # so full-seg slices are safe to feed through the reductions below.
        v = proj[0 * seg:1 * seg].astype(cdt)        # conv_v_right(x)   (seg, HW)
        g = proj[1 * seg:2 * seg].astype(cdt)        # conv_q_left(x)    (seg, HW)
        theta = proj[2 * seg:3 * seg].astype(cdt)    # conv_v_left(x)    (seg, HW)
        q = proj[3 * seg:3 * seg + 1]                # conv_q_right(x)   (1, HW) f32

        # ---------------- spatial_pool (channel-attention branch) ----------------
        q = q - jnp.max(q, axis=-1, keepdims=True)
        qe = jnp.exp(q)
        attn = (qe * pl.reciprocal(jnp.sum(qe, axis=-1, keepdims=True),
                                   approx=True)).astype(cdt)             # (1, HW)
        # context[c] = sum_h v[c,h]*attn[h]  -> VPU mul + lane reduce (f32 accumulate)
        context = jnp.sum(v * attn, axis=-1, keepdims=True,
                          dtype=jnp.float32)                             # (seg, 1)
        ctx_up = jnp.dot(wup_t, context, preferred_element_type=jnp.float32)  # (planes, 1)
        mask_ch = jax.nn.sigmoid(ctx_up)                                 # (C, 1)  (planes==C)

        # ---------------- channel_pool (spatial-attention branch) ----------------
        # NOTE: matches the provided module: softmax over HW applied AFTER avg . theta.
        avg = jnp.mean(g, axis=-1, keepdims=True, dtype=jnp.float32).astype(cdt)  # (seg, 1)
        ctx2 = jnp.sum(theta * avg, axis=0, keepdims=True, dtype=jnp.float32)     # (1, HW)
        ctx2 = ctx2 - jnp.max(ctx2, axis=-1, keepdims=True)
        ce = jnp.exp(ctx2)
        sm = ce * pl.reciprocal(jnp.sum(ce, axis=-1, keepdims=True), approx=True)
        mask_sp = jax.nn.sigmoid(sm)                                     # (1, HW)

        # ---- fused finalize in the storage dtype: x*mask_ch + x*mask_sp ----
        mask = mask_ch.astype(o_ref.dtype) + mask_sp.astype(o_ref.dtype)  # (C, HW) broadcast
        o_ref[bi] = x * mask
        return carry

    jax.lax.fori_loop(0, bt, body, None, unroll=True)


def _tpu_vmem_bytes():
    """Physical per-TensorCore VMEM; conservative 64 MiB (v7x) fallback."""
    try:
        info = pltpu.get_tpu_info()
        for name in ("vmem_capacity_bytes", "vmem_size_bytes", "vmem_bytes"):
            v = getattr(info, name, None)
            if isinstance(v, (int, float)) and v > 0:
                return int(v)
    except Exception:
        pass
    return 64 * 1024 * 1024


def _pick_batch_block(batch, blk_bytes, interm_bytes, w_bytes, vmem_cap,
                      target_bytes, want_two_steps):
    """Pack several batch elements per grid step (amortize the ~0.35us/step
    overhead) bounded by the bt-aware VMEM budget; keep >= 2 grid steps only
    on multi-TensorCore parts (megacore)."""
    def fits(cand):
        if cand > 1 and cand * blk_bytes > target_bytes:
            return False
        need = 4 * cand * blk_bytes + 2 * w_bytes + cand * interm_bytes + (4 << 20)
        if need > vmem_cap:
            return False
        if want_two_steps and batch >= 2 and pl.cdiv(batch, cand) < 2:
            return False
        return True

    hi = min(batch, 8)
    for cand in range(hi, 1, -1):               # prefer exact divisors
        if batch % cand == 0 and fits(cand):
            return cand
    for cand in range(hi, 1, -1):               # allow a partial (padded) last block
        waste = pl.cdiv(batch, cand) * cand - batch
        if 3 * waste <= batch and fits(cand):
            return cand
    return 1


def psa_p_forward(x_nchw, wvr, wqr, wup, wql, wvl, *, projection_dtype=None):
    """PSA_p forward.  x_nchw: (B, C, H, W), C == inplanes.
    Weights stored (Cin, Cout):
      wvr (C, Cip) conv_v_right   wqr (C, 1)   conv_q_right
      wql (C, Cip) conv_q_left    wvl (C, Cip) conv_v_left
      wup (Cip, planes) conv_up   (requires planes == inplanes, as in the module).
    projection_dtype: optional (e.g. jnp.bfloat16) to run the big MXU
      projection / branch intermediates in bf16 with f32 accumulation."""
    B, C, H, W = x_nchw.shape
    HW = H * W
    cip = wvr.shape[1]
    planes = wup.shape[1]
    assert planes == C, "PSA_p requires planes == inplanes (x * mask_ch broadcast)"

    # Native-layout view (B, C, HW): pure reshape, no transpose / HBM shuffle.
    x = x_nchw.reshape(B, C, HW)
    cdt = jnp.dtype(projection_dtype) if projection_dtype is not None else jnp.dtype(x.dtype)

    # Fused projection weight; every segment padded to an 8-row sublane boundary
    # so the in-kernel proj slices never cross (8,128) tile boundaries.
    seg = -(-cip // 8) * 8

    def seg_rows(w, rows):                      # (C, cout) -> (rows, C), zero-padded
        wt = w.T.astype(jnp.float32)
        return jnp.pad(wt, ((0, rows - wt.shape[0]), (0, 0)))

    wcat = jnp.concatenate([seg_rows(wvr, seg), seg_rows(wql, seg),
                            seg_rows(wvl, seg), seg_rows(wqr, 8)],
                           axis=0).astype(cdt)                  # (3*seg+8, C)
    ctot_pad = wcat.shape[0]
    wup_t = jnp.pad(wup.T.astype(jnp.float32),
                    ((0, 0), (0, seg - cip)))                   # (planes, seg) f32

    itemsize = jnp.dtype(x.dtype).itemsize
    csize = jnp.dtype(cdt).itemsize

    blk_per = C * HW * itemsize                                 # one element of x (== out)
    w_bytes = ctot_pad * C * csize + planes * seg * 4
    # Per-batch-element in-kernel intermediates (bt-aware budget, conservative):
    interm_per = (ctot_pad * HW * 4                 # proj (f32 accumulation)
                  + 3 * seg * HW * csize            # v / g / theta in compute dtype
                  + 2 * seg * HW * max(csize, 4)    # reduction temporaries / f32 upcasts
                  + C * HW * itemsize               # finalize mask*x product
                  + (64 << 10))

    vmem_phys = _tpu_vmem_bytes()
    vmem_cap = int(vmem_phys * 4 // 5)              # ~20% headroom for compiler scratch
    multi_core = vmem_phys <= (64 << 20)            # 64 MiB/TC -> v7x (2 TensorCores/chip)
    target = (3 << 20) if multi_core else (6 << 20)

    bt = _pick_batch_block(B, blk_per, interm_per, w_bytes, vmem_cap, target, multi_core)
    nsteps = pl.cdiv(B, bt)

    needed = 4 * bt * blk_per + 2 * w_bytes + bt * interm_per + (4 << 20)
    vmem_limit = int(min(max(needed, 32 << 20), vmem_cap))
    # TODO(synk): for B==1 (or huge H*W) on 2-core parts, add a second grid axis over HW
    # lane-tiles with a two-pass/online softmax so both TensorCores get work and the
    # proj/x blocks stay bounded; not needed at these shapes.

    kernel = functools.partial(psa_p_kernel, seg=seg)
    out = pl.pallas_call(
        kernel,
        out_shape=jax.ShapeDtypeStruct((B, C, HW), x.dtype),
        grid_spec=pltpu.PrefetchScalarGridSpec(
            num_scalar_prefetch=0,
            grid=(nsteps,),
            in_specs=[
                pl.BlockSpec((bt, C, HW), lambda b: (b, 0, 0)),
                # TODO(synk): mark the two constant-index weight blocks single-buffered
                # (pipeline_mode=pl.Buffered(1)) once confirmed stable; budget already
                # counts them double-buffered.
                pl.BlockSpec((ctot_pad, C), lambda b: (0, 0)),
                pl.BlockSpec((planes, seg), lambda b: (0, 0)),
            ],
            out_specs=pl.BlockSpec((bt, C, HW), lambda b: (b, 0, 0)),
        ),
        compiler_params=pltpu.CompilerParams(
            dimension_semantics=("parallel",),
            vmem_limit_bytes=vmem_limit,
        ),
    )(x, wcat, wup_t)

    return out.reshape(B, C, H, W)


def psa_p_reference(x_nchw, wvr, wqr, wup, wql, wvl):
    """Pure-JAX reference mirroring the provided PyTorch module exactly (NCHW)."""
    B, C, H, W = x_nchw.shape
    HW = H * W

    # spatial_pool
    input_x = jnp.einsum('bchw,co->bohw', x_nchw, wvr).reshape(B, -1, HW)   # (B, Cip, HW)
    mask = jnp.einsum('bchw,co->bohw', x_nchw, wqr).reshape(B, 1, HW)       # (B, 1, HW)
    mask = jax.nn.softmax(mask, axis=2)
    context = jnp.einsum('bch,bkh->bck', input_x, mask)                     # (B, Cip, 1)
    context = jnp.einsum('bck,co->bok', context, wup)                       # (B, planes, 1)
    mask_ch = jax.nn.sigmoid(context)[..., None]                            # (B, planes, 1, 1)
    out_channel = x_nchw * mask_ch

    # channel_pool
    g = jnp.einsum('bchw,co->bohw', x_nchw, wql)                            # (B, Cip, H, W)
    avg = jnp.mean(g, axis=(2, 3))[:, None, :]                              # (B, 1, Cip)
    theta = jnp.einsum('bchw,co->bohw', x_nchw, wvl).reshape(B, -1, HW)     # (B, Cip, HW)
    ctx2 = jnp.einsum('bkc,bch->bkh', avg, theta)                           # (B, 1, HW)
    ctx2 = jax.nn.softmax(ctx2, axis=2).reshape(B, 1, H, W)
    mask_sp = jax.nn.sigmoid(ctx2)
    out_spatial = x_nchw * mask_sp

    return out_spatial + out_channel


def init_params(key, inplanes, planes):
    """conv_{q,v}_{left,right}: kaiming_normal fan_in (std = sqrt(2/Cin));
    conv_up: PyTorch default conv init.  Weights returned (Cin, Cout)."""
    inter = planes // 2
    k1, k2, k3, k4, k5 = jax.random.split(key, 5)
    std = (2.0 / inplanes) ** 0.5
    wvr = std * jax.random.normal(k1, (inplanes, inter), jnp.float32)   # conv_v_right
    wqr = std * jax.random.normal(k2, (inplanes, 1), jnp.float32)       # conv_q_right
    wql = std * jax.random.normal(k3, (inplanes, inter), jnp.float32)   # conv_q_left
    wvl = std * jax.random.normal(k4, (inplanes, inter), jnp.float32)   # conv_v_left
    bound = 1.0 / (inter ** 0.5)
    wup = jax.random.uniform(k5, (inter, planes), jnp.float32, -bound, bound)  # conv_up
    return wvr, wqr, wup, wql, wvl


if __name__ == "__main__":
    B, C, H, W = 2, 4, 16, 16     # inplanes = planes = 4, inter_planes = 2
    key = jax.random.PRNGKey(0)
    kx, kp = jax.random.split(key)
    x = jax.random.normal(kx, (B, C, H, W), jnp.float32)
    params = init_params(kp, C, C)

    out = jax.block_until_ready(psa_p_forward(x, *params))
    ref = psa_p_reference(x, *params)
    assert out.shape == (B, C, H, W)
    # approx (EUP) reciprocal in the softmax => slightly looser tolerance than exact divide
    assert jnp.allclose(out, ref, atol=5e-3, rtol=5e-3), "f32 mismatch vs reference"

    # bf16 storage / projection path (f32 accumulation, f32 softmax/sigmoid in-kernel)
    out_bf = jax.block_until_ready(
        psa_p_forward(x.astype(jnp.bfloat16),
                      *[p.astype(jnp.bfloat16) for p in params]))
    assert out_bf.dtype == jnp.bfloat16
    assert jnp.allclose(out_bf.astype(jnp.float32), ref, atol=6e-2, rtol=6e-2), \
        "bf16 mismatch vs reference"

    # Non-divisible batch (exercises the pl.cdiv grid / partial-last-block path)
    x3 = jax.random.normal(jax.random.PRNGKey(1), (3, C, H, W), jnp.float32)
    out3 = jax.block_until_ready(psa_p_forward(x3, *params))
    ref3 = psa_p_reference(x3, *params)
    assert jnp.allclose(out3, ref3, atol=5e-3, rtol=5e-3), "odd-batch mismatch vs reference"

    print("KERNEL_OK")
</pallas_src>

<mosaic_0001>
module attributes {stable_mosaic.version = 11 : i64} {
  func.func @psa_p_kernel(%arg0: i32, %arg1: memref<1x4x256xf32, #tpu.memory_space<vmem>>, %arg2: memref<32x4xf32, #tpu.memory_space<vmem>>, %arg3: memref<4x8xf32, #tpu.memory_space<vmem>>, %arg4: memref<1x4x256xf32, #tpu.memory_space<vmem>>) attributes {dimension_semantics = [#tpu.dimension_semantics<parallel>], iteration_bounds = array<i64: 2>, scalar_prefetch = 0 : i64, scratch_operands = 0 : i64, tpu.core_type = #tpu.core_type<tc>, window_params = [{transform_indices = @transform_0, window_bounds = array<i64: 1, 4, 256>}, {pipeline_mode = #tpu.pipeline_mode<synchronous>, transform_indices = @transform_1, window_bounds = array<i64: 32, 4>}, {pipeline_mode = #tpu.pipeline_mode<synchronous>, transform_indices = @transform_2, window_bounds = array<i64: 4, 8>}, {transform_indices = @transform_3, window_bounds = array<i64: 1, 4, 256>}]} {
    %c0 = arith.constant 0 : index
    %c0_0 = arith.constant 0 : index
    %0 = vector.load %arg2[%c0, %c0_0] : memref<32x4xf32, #tpu.memory_space<vmem>>, vector<32x4xf32>
    %c0_1 = arith.constant 0 : index
    %c0_2 = arith.constant 0 : index
    %1 = vector.load %arg3[%c0_1, %c0_2] : memref<4x8xf32, #tpu.memory_space<vmem>>, vector<4x8xf32>
    %c0_i32 = arith.constant 0 : i32
    %2 = arith.index_cast %c0_i32 : i32 to index
    %c0_3 = arith.constant 0 : index
    %c0_4 = arith.constant 0 : index
    %3 = vector.load %arg1[%2, %c0_3, %c0_4] : memref<1x4x256xf32, #tpu.memory_space<vmem>>, vector<1x4x256xf32>
    %4 = vector.shape_cast %3 : vector<1x4x256xf32> to vector<4x256xf32>
    %cst = arith.constant dense<0.000000e+00> : vector<32x256xf32>
    %5 = tpu.matmul %0, %4, %cst {dimension_numbers = #tpu.dot_dimension_numbers<[1], [0], [0], [1], [0, 0, 1, 1], [], []>} : vector<32x4xf32>, vector<4x256xf32>, vector<32x256xf32> -> vector<32x256xf32>
    %6 = vector.extract_strided_slice %5 {offsets = [0, 0], sizes = [8, 256], strides = [1, 1]} : vector<32x256xf32> to vector<8x256xf32>
    %7 = vector.extract_strided_slice %5 {offsets = [8, 0], sizes = [8, 256], strides = [1, 1]} : vector<32x256xf32> to vector<8x256xf32>
    %8 = vector.extract_strided_slice %5 {offsets = [16, 0], sizes = [8, 256], strides = [1, 1]} : vector<32x256xf32> to vector<8x256xf32>
    %9 = vector.extract_strided_slice %5 {offsets = [24, 0], sizes = [1, 256], strides = [1, 1]} : vector<32x256xf32> to vector<1x256xf32>
    %cst_5 = arith.constant dense<0xFF800000> : vector<1xf32>
    %10 = vector.multi_reduction <maximumf>, %9, %cst_5 [1] : vector<1x256xf32> to vector<1xf32>
    %11 = vector.shape_cast %10 : vector<1xf32> to vector<1x1xf32>
    %12 = vector.broadcast %11 : vector<1x1xf32> to vector<1x256xf32>
    %13 = arith.subf %9, %12 : vector<1x256xf32>
    %14 = math.exp %13 : vector<1x256xf32>
    %cst_6 = arith.constant dense<0.000000e+00> : vector<1xf32>
    %15 = vector.multi_reduction <add>, %14, %cst_6 [1] : vector<1x256xf32> to vector<1xf32>
    %16 = vector.shape_cast %15 : vector<1xf32> to vector<1x1xf32>
    %17 = tpu.reciprocal %16 {approx = true} : vector<1x1xf32> -> vector<1x1xf32>
    %18 = vector.broadcast %17 : vector<1x1xf32> to vector<1x256xf32>
    %19 = arith.mulf %14, %18 : vector<1x256xf32>
    %20 = vector.broadcast %19 : vector<1x256xf32> to vector<8x256xf32>
    %21 = arith.mulf %6, %20 : vector<8x256xf32>
    %cst_7 = arith.constant dense<0.000000e+00> : vector<8xf32>
    %22 = vector.multi_reduction <add>, %21, %cst_7 [1] : vector<8x256xf32> to vector<8xf32>
    %23 = vector.shape_cast %22 : vector<8xf32> to vector<8x1xf32>
    %cst_8 = arith.constant dense<0.000000e+00> : vector<4x1xf32>
    %24 = tpu.matmul %1, %23, %cst_8 {dimension_numbers = #tpu.dot_dimension_numbers<[1], [0], [0], [1], [0, 0, 1, 1], [], []>} : vector<4x8xf32>, vector<8x1xf32>, vector<4x1xf32> -> vector<4x1xf32>
    %25 = arith.negf %24 : vector<4x1xf32>
    %26 = math.exp %25 : vector<4x1xf32>
    %cst_9 = arith.constant 1.000000e+00 : f32
    %27 = vector.broadcast %cst_9 : f32 to vector<4x1xf32>
    %28 = arith.addf %27, %26 : vector<4x1xf32>
    %29 = arith.divf %27, %28 : vector<4x1xf32>
    %cst_10 = arith.constant dense<0.000000e+00> : vector<8xf32>
    %30 = vector.multi_reduction <add>, %7, %cst_10 [1] : vector<8x256xf32> to vector<8xf32>
    %31 = vector.shape_cast %30 : vector<8xf32> to vector<8x1xf32>
    %cst_11 = arith.constant 2.560000e+02 : f32
    %32 = vector.broadcast %cst_11 : f32 to vector<8x1xf32>
    %33 = arith.divf %31, %32 : vector<8x1xf32>
    %34 = vector.broadcast %33 : vector<8x1xf32> to vector<8x256xf32>
    %35 = arith.mulf %8, %34 : vector<8x256xf32>
    %cst_12 = arith.constant dense<0.000000e+00> : vector<256xf32>
    %36 = vector.multi_reduction <add>, %35, %cst_12 [0] : vector<8x256xf32> to vector<256xf32>
    %37 = vector.shape_cast %36 : vector<256xf32> to vector<1x256xf32>
    %cst_13 = arith.constant dense<0xFF800000> : vector<1xf32>
    %38 = vector.multi_reduction <maximumf>, %37, %cst_13 [1] : vector<1x256xf32> to vector<1xf32>
    %39 = vector.shape_cast %38 : vector<1xf32> to vector<1x1xf32>
    %40 = vector.broadcast %39 : vector<1x1xf32> to vector<1x256xf32>
    %41 = arith.subf %37, %40 : vector<1x256xf32>
    %42 = math.exp %41 : vector<1x256xf32>
    %cst_14 = arith.constant dense<0.000000e+00> : vector<1xf32>
    %43 = vector.multi_reduction <add>, %42, %cst_14 [1] : vector<1x256xf32> to vector<1xf32>
    %44 = vector.shape_cast %43 : vector<1xf32> to vector<1x1xf32>
    %45 = tpu.reciprocal %44 {approx = true} : vector<1x1xf32> -> vector<1x1xf32>
    %46 = vector.broadcast %45 : vector<1x1xf32> to vector<1x256xf32>
    %47 = arith.mulf %42, %46 : vector<1x256xf32>
    %48 = arith.negf %47 : vector<1x256xf32>
    %49 = math.exp %48 : vector<1x256xf32>
    %cst_15 = arith.constant 1.000000e+00 : f32
    %50 = vector.broadcast %cst_15 : f32 to vector<1x256xf32>
    %51 = arith.addf %50, %49 : vector<1x256xf32>
    %52 = arith.divf %50, %51 : vector<1x256xf32>
    %53 = vector.broadcast %29 : vector<4x1xf32> to vector<4x256xf32>
    %54 = vector.broadcast %52 : vector<1x256xf32> to vector<4x256xf32>
    %55 = arith.addf %53, %54 : vector<4x256xf32>
    %56 = arith.mulf %4, %55 : vector<4x256xf32>
    %57 = arith.index_cast %c0_i32 : i32 to index
    %c0_16 = arith.constant 0 : index
    %c0_17 = arith.constant 0 : index
    %58 = vector.load %arg4[%57, %c0_16, %c0_17] : memref<1x4x256xf32, #tpu.memory_space<vmem>>, vector<1x4x256xf32>
    %59 = vector.shape_cast %58 : vector<1x4x256xf32> to vector<4x256xf32>
    %60 = vector.shape_cast %56 : vector<4x256xf32> to vector<1x4x256xf32>
    tpu.vector_store %arg4[%57, %c0_16, %c0_17], %60 {strides = array<i32>} : memref<1x4x256xf32, #tpu.memory_space<vmem>>, vector<1x4x256xf32>,
    %c1_i32 = arith.constant 1 : i32
    return
  }
  func.func @transform_0(%arg0: i32) -> (i32, i32, i32) {
    %c0_i32 = arith.constant 0 : i32
    %c0_i32_0 = arith.constant 0 : i32
    %c0_i32_1 = arith.constant 0 : i32
    return %arg0, %c0_i32, %c0_i32_0 : i32, i32, i32
  }
  func.func @transform_1(%arg0: i32) -> (i32, i32) {
    %c0_i32 = arith.constant 0 : i32
    %c0_i32_0 = arith.constant 0 : i32
    %c0_i32_1 = arith.constant 0 : i32
    return %c0_i32, %c0_i32_0 : i32, i32
  }
  func.func @transform_2(%arg0: i32) -> (i32, i32) {
    %c0_i32 = arith.constant 0 : i32
    %c0_i32_0 = arith.constant 0 : i32
    %c0_i32_1 = arith.constant 0 : i32
    return %c0_i32, %c0_i32_0 : i32, i32
  }
  func.func @transform_3(%arg0: i32) -> (i32, i32, i32) {
    %c0_i32 = arith.constant 0 : i32
    %c0_i32_0 = arith.constant 0 : i32
    %c0_i32_1 = arith.constant 0 : i32
    return %arg0, %c0_i32, %c0_i32_0 : i32, i32, i32
  }
}

</mosaic_0001>

<bundles_post_ra>
// kernel: tpu_custom_call.1
= control target key start
LH: loop header
LB: loop body
LE: loop exit
PB: predicated region body
PF: predicated region fallthrough
CT: control target
= control target key end

     0   :  { %8 = vsyncpa [#allocation3], 0  ;;  %s855_s0 = inlined_call_operand.vmem [shape: f32[2,4,256], index: 0, kind: input, shape index: {}]   ;;  %s856_s1 = inlined_call_operand.vmem [shape: f32[32,4], index: 1, kind: input, shape index: {}]   ;;  %s857_s2 = inlined_call_operand.vmem [shape: f32[4,8], index: 2, kind: input, shape index: {}]   ;;  %s858_s3 = inlined_call_operand.hbm [shape: f32[2,4,256], index: 3, kind: output, shape index: {}]  }
   0x1   :  { %10 = vsyncpa [#allocation3 + $0x1], 0  ;;  %s719_s12 = smov 0   ;;  %s721_s13 = smov 0  }
   0x2   :  { %s723_s14 = smov 0   ;;  %s725_s15 = smov 0  }
   0x3 LB: > { %s740_s16 = sadd.s32 4294967295, %s693_s15   ;;  %s530_s17 = sadd.s32 4294967294, %s693_s15   ;;  %s693_s15 = sphi %s725_s15, %s864_s15   ;;  %s689_s14 = sphi %s723_s14, %s863_s14   ;;  %s685_s13 = sphi %s721_s13, %s862_s13   ;;  %s681_s12 = sphi %s719_s12, %s861_s12  }
   0x4   : > { %s744_s18 = sadd.s32 1, %s693_s15   ;;  %s91_s19 = sadd.s32 1, %s689_s14 }
   0x5   : > { %s88_s20 = ssub.s32 %s693_s15, %s744_s18  ;;  %p101_p0 = scmp.ne.s32.totalorder %s689_s14, %s685_s13 }
   0x6   : > { %p89_p1 = scmp.eq.s32.totalorder %s88_s20, 0  ;;  %p102_p2 = scmp.eq.s32.totalorder %s740_s16, 1 }
   0x7   : > { %p107_p3 = scmp.ne.s32.totalorder %s685_s13, %s681_s12  ;;  %p108_p4 = scmp.eq.s32.totalorder %s530_s17, 1 }
   0x8   : > { %s755_s21 = scalar_select %p89_p1, %s689_s14, %s91_s19  }
   0x9   : > { %p757_p5 = por %p102_p2, %p101_p0  ;;  %p761_p6 = por %p108_p4, %p107_p3 }
   0xa   : > { %p533_p7 = scmp.ge.s32.totalorder %s693_s15, 1  ;;  %p140_p8 = scmp.lt.s32.totalorder %s693_s15, 3 }
   0xc   : > { %p141_p9 = pnand %p533_p7, %p140_p8 }
   0xd   : > { %p164_p10 = scmp.lt.s32.totalorder (!%p141_p9), %s740_s16, 1  ;;  %v695_v0 = vmov (!%p141_p9), 0.0   ;;  %vm190_vm0 = vcmask (!%p141_p9), 1043456   ;;  %v172_v3 = vld [vmem:[%s856_s1 + $0x18] sm:$0xff] (!%p141_p9)  ;;  %vm177_vm1 = vcmask (!%p141_p9), 31744   ;;  %v169_v4 = vld [vmem:[%s856_s1] sm:$0xff] (!%p141_p9)  ;;  %v304_v28 = vlaneseq (!%p141_p9) }
   0xe   : > { %144 = sbr.rel (%p141_p9) target bundleno = 1097 (0x449), region = 32  ;;  %277 = vmatprep.mubr.f32.mxu1 (!%p141_p9), %v695_v0  ;;  %259 = vmatprep.mubr.f32.mxu0 (!%p141_p9), %v695_v0  ;;  %v170_v5 = vld [vmem:[%s856_s1 + $0x8] sm:$0xff] (!%p141_p9)  ;;  %vm284_vm2 = vcmask (!%p141_p9), 1040384   ;;  %v171_v11 = vld [vmem:[%s856_s1 + $0x10] sm:$0xff] (!%p141_p9)  ;;  %vm696_vm3 = vmmov (!%p141_p9), 0   ;;  %vm317_vm4 = vcmask (!%p141_p9), 64512  }
   0xf   : > { %v305_v29 = vshrl.u32 (!%p141_p9), %v304_v28, 7  ;;  %v173_v41 = vld [vmem:[%s857_s2] sm:$0xf] (!%p141_p9)  ;;  %v697_v60 = vmov (!%p141_p9), 0   ;;  %s161_s17 = sand.u32 (!%p141_p9), 1, %s685_s13   ;;  %s553_s20 = sshll.u32 (!%p141_p9), %s740_s16, 7 }
  0x10   : > { %605 = vset.pattern.permute.xlu0 (!%p141_p9), %v697_v60  ;;  %s534_s19 = sshll.u32 (!%p141_p9), %s161_s17, 3  ;;  %s457_s29 = scalar_lea.sflag (!%p141_p9), [#allocation3], %s161_s17 }
  0x11   : > { %v306_v30 = vsub.s32 (!%p141_p9), 0, %v305_v29 }
  0x15   : > { %s165_s24 = scalar_select %p164_p10, %s740_s16, 1 }
  0x16   : > { %s698_s16 = smov [#allocation2]  }
  0x17   : > { %s552_s25 = sshll.u32 %s165_s24, 3  ;;  %s163_s24 = scalar_lea.vmem [#allocation2], %s534_s19 }
  0x18   : > { %s168_s28 = scalar_lea.vmem %s855_s0, %s552_s25  ;;  %s471_s25 = sshll.u32 %s163_s24, 4  ;;  %s815_s25 = int_to_ptr.vmem [resolvable:$true] %s471_s25 }
  0x19   : > { %v774_v1 = vld [vmem:[%s168_s28] sm:$0xff]  ;;  %s813_s28 = scalar_lea.hbm %s858_s3, %s553_s20  ;;  %s631_s30 = scalar_lea.vmem %s815_s25, 128 }
  0x1a   : > { %v176_v2 = vcombine.high %v774_v1, %v774_v1  ;;  %p632_p11 = scmp.ne.s32.totalorder %s815_s25, %s631_s30  ;;  %s635_s4 = sshll.u32 %s698_s16, 4  ;;  %s636_s4 = int_to_ptr.vmem [resolvable:$false] %s635_s4 }
  0x1b   : > { %s637_s5 = scalar_lea.vmem %s636_s4, 256  ;;  %p638_p0 = scmp.lt.s32.totalorder %s815_s25, %s636_s4 }
  0x1c   : > { %561 = vmatprep.subr.msk.mxu1 %vm190_vm0, %v176_v2  ;;  %537 = vmatprep.subr.msk.mxu0 %vm190_vm0, %v176_v2  ;;  %p633_p12 = pnand %p632_p11, %p757_p5  ;;  %p639_p1 = scmp.lt.s32.totalorder %s637_s5, %s631_s30 }
  0x1d   : > { %562 = vmatpush1.msk.msra.mxu1 %vm190_vm0, %v774_v1  ;;  %538 = vmatpush1.msk.msra.mxu0 %vm190_vm0, %v774_v1 }
  0x1e   : > { %542 = vmatmul.mubr.msk.f32.vlgmr.msra.gmra.mrb[0].mxu1 %vm177_vm1, %v172_v3  ;;  %556 = vmatprep.subr.mxu1 %v695_v0  ;;  %p634_p13 = pneg %p633_p12  ;;  %p640_p2 = por %p639_p1, %p638_p0 }
  0x1f   : > { %539 = vmatmul.mubr.msk.f32.vlgmr.msra.gmra.mrb[0].mxu0 %vm177_vm1, %v169_v4  ;;  %558 = vmatprep.mubr.msk.f32.mxu1 %vm696_vm3, %v695_v0 }
  0x20   : > { %265 = vmatprep.mubr.f32.mxu0 %v695_v0  ;;  %p641_p3 = pnand %p640_p2, %p634_p13 }
  0x23   : > { %540 = vmatmul.mubr.msk.f32.gmra.mrb[2].mxu0 %vm177_vm1, %v170_v5 }
  0x24   : > { %271 = vmatprep.mubr.f32.mxu0 %v695_v0 }
  0x27   : > { %541 = vmatmul.mubr.msk.f32.gmra.mrb[4].mxu0 %vm177_vm1, %v171_v11 }
  0xf1   : > { %v279_v6 = vpop.f32.mrb[0].mxu1 }
  0xf2   : > { %v281_v7 = vpop.f32.mrb[1].mxu1  ;;  %v285_v8 = vsel %vm284_vm2, %v279_v6, -inf  ;;  %v261_v22 = vpop.f32.mrb[0].mxu0 }
  0xf3   : > { %v286_v9 = vsel %vm284_vm2, %v281_v7, -inf  ;;  %v263_v23 = vpop.f32.mrb[1].mxu0 }
  0xf4   : > { %v287_v10 = vmax.f32 %v285_v8, %v286_v9 }
  0xf6   : > { %288 = vmax.xlane.f32.xlu0 %v287_v10  ;;  %v267_v24 = vpop.f32.mrb[2].mxu0 }
  0xf7   : > { %v269_v25 = vpop.f32.mrb[3].mxu0 }
  0xf8   : > { %v397_v26 = vadd.f32 %v269_v25, %v267_v24 }
  0xfa   : > { %v273_v39 = vpop.f32.mrb[4].mxu0 }
  0xfb   : > { %v275_v40 = vpop.f32.mrb[5].mxu0 }
 0x183   : > { %v289_v12 = vpop.xlane.xlu0 %288 }
 0x184   : > { %v290_v13 = vsub.f32 %v279_v6, %v289_v12  ;;  %v291_v14 = vsub.f32 %v281_v7, %v289_v12 }
 0x186   : > { %v292_v15 = vmul.f32 1.442695, %v290_v13  ;;  %v294_v16 = vmul.f32 1.442695, %v291_v14 }
 0x188   : > { %607 = vpow2.f32 %v292_v15 }
 0x189   : > { %609 = vpow2.f32 %v294_v16 }
 0x192   : > { %v608_v17 = vpop.eup %607 }
 0x193   : > { %v610_v18 = vpop.eup %609  ;;  %v296_v19 = vsel %vm284_vm2, %v608_v17, 0.0 }
 0x194   : > { %v297_v20 = vsel %vm284_vm2, %v610_v18, 0.0 }
 0x195   : > { %v298_v21 = vadd.f32 %v297_v20, %v296_v19 }
 0x197   : > { %299 = vadd.xlane.f32.xlu0 %v298_v21 }
 0x224   : > { %v300_v27 = vpop.xlane.xlu0 %299 }
 0x225   : > { %611 = vrcp.f32 %v300_v27 }
 0x22f   : > { %v612_v31 = vpop.eup %611 }
 0x230   : > { %v302_v32 = vmul.f32 %v612_v31, %v608_v17  ;;  %v303_v33 = vmul.f32 %v612_v31, %v610_v18 }
 0x232   : > { %v307_v34 = vrot.slane %v302_v32, %v306_v30  ;;  %v311_v35 = vrot.slane %v303_v33, %v306_v30 }
 0x234   : > { %v312_v36 = vmul.f32 %v307_v34, %v261_v22  ;;  %v313_v37 = vmul.f32 %v311_v35, %v263_v23 }
 0x236   : > { %v314_v38 = vadd.f32 %v313_v37, %v312_v36 }
 0x238   : > { %315 = vadd.xlane.f32.xlu1 %v314_v38 }
 0x23c   : > { %398 = vadd.xlane.f32.xlu1 %v397_v26 }
 0x2c5   : > { %v316_v42 = vpop.xlane.xlu1 %315 }
 0x2c6   : > { %557 = vmatpush3.msra.mxu1 %v316_v42 }
 0x2c7   : > { %559 = vmatmul.mubr.msk.f32.vlgmr.msra.gmra.mrb[2].mxu1 %vm317_vm4, %v173_v41 }
 0x2c9   : > { %v399_v43 = vpop.xlane.xlu1 %398 }
 0x2ca   : > { %v401_v44 = vmul.f32 0.00390625, %v399_v43 }
 0x2cc   : > { %v402_v45 = vmul.f32 %v401_v44, %v273_v39  ;;  %v403_v46 = vmul.f32 %v401_v44, %v275_v40 }
 0x2ce   : > { %v404_v47 = vrot.slane %v402_v45, 4  ;;  %v410_v48 = vrot.slane %v403_v46, 4 }
 0x2d0   : > { %v405_v49 = vadd.f32 %v404_v47, %v402_v45  ;;  %v411_v50 = vadd.f32 %v410_v48, %v403_v46 }
 0x2d2   : > { %v406_v51 = vrot.slane %v405_v49, 2  ;;  %v412_v52 = vrot.slane %v411_v50, 2 }
 0x2d4   : > { %v407_v53 = vadd.f32 %v406_v51, %v405_v49  ;;  %v413_v54 = vadd.f32 %v412_v52, %v411_v50 }
 0x2d6   : > { %v408_v55 = vrot.slane %v407_v53, 1  ;;  %v414_v56 = vrot.slane %v413_v54, 1 }
 0x2d8   : > { %v409_v57 = vadd.f32 %v408_v55, %v407_v53  ;;  %v415_v58 = vadd.f32 %v414_v56, %v413_v54 }
 0x2da   : > { %v416_v59 = vmax.f32 %v409_v57, %v415_v58 }
 0x2dc   : > { %417 = vmax.xlane.f32.xlu0 %v416_v59 }
 0x369   : > { %v418_v61 = vpop.xlane.xlu0 %417 }
 0x36a   : > { %v419_v62 = vsub.f32 %v409_v57, %v418_v61  ;;  %v420_v63 = vsub.f32 %v415_v58, %v418_v61 }
 0x36c   : > { %v421_v0 = vmul.f32 1.442695, %v419_v62  ;;  %v423_v2 = vmul.f32 1.442695, %v420_v63 }
 0x36e   : > { %613 = vpow2.f32 %v421_v0 }
 0x36f   : > { %615 = vpow2.f32 %v423_v2 }
 0x378   : > { %v614_v3 = vpop.eup %613 }
 0x379   : > { %v616_v4 = vpop.eup %615 }
 0x37a   : > { %v425_v5 = vadd.f32 %v616_v4, %v614_v3 }
 0x37c   : > { %426 = vadd.xlane.f32.xlu1 %v425_v5 }
 0x39a   : > { %v387_v6 = vpop.f32.mrb[2].mxu1 }
 0x39b   : > { %v544_v7 = vmul.f32 -1.442695, %v387_v6  ;;  %v560_v8 = vpop.f32.mrb[3].mxu1 }
 0x39d   : > { %617 = vpow2.f32 %v544_v7 }
 0x3a7   : > { %v618_v9 = vpop.eup %617 }
 0x3a8   : > { %v394_v10 = vadd.f32 1.0, %v618_v9 }
 0x3aa   : > { %619 = vrcp.f32 %v394_v10 }
 0x3b4   : > { %v620_v11 = vpop.eup %619 }
 0x3b5   : > { %445 = vperm.xlu0 %605, %v620_v11  }
 0x409   : > { %v427_v12 = vpop.xlane.xlu1 %426 }
 0x40a   : > { %621 = vrcp.f32 %v427_v12 }
 0x414   : > { %v622_v13 = vpop.eup %621 }
 0x415   : > { %v429_v14 = vmul.f32 %v622_v13, %v614_v3  ;;  %v430_v15 = vmul.f32 %v622_v13, %v616_v4 }
 0x417   : > { %v545_v16 = vmul.f32 -1.442695, %v429_v14  ;;  %v546_v17 = vmul.f32 -1.442695, %v430_v15 }
 0x419   : > { %623 = vpow2.f32 %v545_v16 }
 0x41a   : > { %625 = vpow2.f32 %v546_v17 }
 0x423   : > { %v624_v18 = vpop.eup %623 }
 0x424   : > { %v626_v19 = vpop.eup %625  ;;  %v437_v20 = vadd.f32 1.0, %v624_v18 }
 0x425   : > { %v438_v21 = vadd.f32 1.0, %v626_v19 }
 0x426   : > { %627 = vrcp.f32 %v437_v20 }
 0x427   : > { %629 = vrcp.f32 %v438_v21 }
 0x430   : > { %v628_v22 = vpop.eup %627 }
 0x431   : > { %v630_v23 = vpop.eup %629 }
 0x434   : > { %v446_v24 = vpop.permute.xlu0 %445 }
 0x435   : > { %v448_v25 = vadd.f32 %v628_v22, %v446_v24  ;;  %v449_v26 = vadd.f32 %v630_v23, %v446_v24 }
 0x437   : > { %v452_v27 = vcombine.low %v448_v25, %v449_v26 }
 0x439   : > { %v454_v28 = vmul.f32 %v452_v27, %v774_v1 }
 0x43b   : > { %455 = vst [vmem:[%s163_s24] sm:$0xff] %v454_v28 }
 0x43c   : > { %644 = shalt.err (!%p641_p3)
}
 0x43d   : > { %s645_s6 = scalar_lea.hbm %s813_s28, 128  ;;  %s649_s9 = scalar_lea.hbm %s858_s3, 256 }
 0x43e   : > { %p646_p4 = scmp.ne.s32.totalorder %s813_s28, %s645_s6  ;;  %p650_p9 = scmp.lt.u32.totalorder %s813_s28, %s858_s3 }
 0x43f   : > { %p651_p10 = scmp.lt.u32.totalorder %s649_s9, %s645_s6  ;;  %p653_p12 = scmp.lt.u32.totalorder %s645_s6, %s813_s28 }
 0x440   : > { %p647_p7 = pnand %p646_p4, %p757_p5 }
 0x441   : > { %p652_p11 = por %p651_p10, %p650_p9 }
 0x442   : > { %p648_p8 = pneg %p647_p7 }
 0x443   : > { %p654_p13 = por %p653_p12, %p652_p11 }
 0x445   : > { %p655_p0 = pnand %p654_p13, %p648_p8 }
 0x447   : > { %658 = shalt.err (!%p655_p0)
}
 0x448   : > { %563 = dma.vmem_to_hbm [thread:$0]  (%p757_p5), %s815_s25, 128, %s813_s28, %s457_s29  }
 0x449 PF: > { %p569_p1 = scmp.ge.s32.totalorder %s693_s15, 2  ;;  %s483_s17 = sand.u32 1, %s681_s12  }
 0x44a   : > { %s484_s19 = scalar_lea.sflag [#allocation3], %s483_s17 }
 0x44b   : > { %p566_p2 = pnand %p569_p1, %p761_p6 }
 0x44d   : > { %676 = dma.done.wait (!%p566_p2), %s484_s19, 128  }
 0x44e   : > { %678 = vsyncadd (!%p566_p2), %s484_s19, 4294967168  ;;  %p13_p3 = scmp.ge.s32.totalorder %s744_s18, 4   ;;  %s861_s12 = smov %s685_s13 }
 0x44f   : > { %s862_s13 = smov %s689_s14  ;;  %s863_s14 = smov %s755_s21 }
 0x450   : > { %s864_s15 = smov %s744_s18  ;;  %15 = sbr.rel (!%p13_p3) target bundleno = 3 (0x3), region = 67 }
 0x457   :  { %489 = vsyncpa [#allocation3], 1 }
 0x458   :  { %491 = vsyncpa [#allocation3 + $0x1], 1 }

</bundles_post_ra>
